<compile_context>
chip_gen: v6e
topology: v6e:2x2x1
jax: 0.10.0
libtpu: 0.0.40
codegen_flags: <defaults>
</compile_context>

<pallas_src>
import functools

import jax
import jax.numpy as jnp
from jax.experimental import pallas as pl
from jax.experimental.pallas import tpu as pltpu


_VMEM_LIMIT = 32 * 1024 * 1024   # safe on v5e/v6e (128 MiB) and v7x (64 MiB phys)
_TILE_M = 512                    # lane-axis tile for the big matmul
_TILE_K = 512                    # reduction tile


def _round_up(x, m):
    return ((x + m - 1) // m) * m


def _full_spec(shape):
    zeros = (0,) * len(shape)
    return pl.BlockSpec(shape, lambda i, _z=zeros: _z)


# --------------------------------------------------------------------------
# Tiled "transposed" dense kernel:  y(OC, M) = act(W(OC,K) @ X(K,M) + b)
# --------------------------------------------------------------------------
def _dense_t_kernel(w_ref, x_ref, b_ref, o_ref, acc_ref, *, activation):
    k = pl.program_id(1)

    @pl.when(k == 0)
    def _init():
        acc_ref[...] = jnp.zeros_like(acc_ref)

    acc_ref[...] += jnp.dot(w_ref[...], x_ref[...],
                            preferred_element_type=jnp.float32)

    @pl.when(k == pl.num_programs(1) - 1)
    def _finish():
        y = acc_ref[...] + b_ref[...]                 # (OC, 1) lane-broadcast
        if activation == "leaky_relu":
            y = jnp.where(y > 0, y, jnp.float32(0.2) * y)
        o_ref[...] = y.astype(o_ref.dtype)


def dense_t(w, x, b, activation="leaky_relu"):
    """w: (OC, K) bf16, x: (K, M) bf16, b: (OC, 1) f32 -> (OC, M) f32.

    M (batch*spatial) is last -> lane-dense output.  Tiled over (M, K);
    OC <= 128 in this network so it is never tiled."""
    oc, k_dim = w.shape
    k2, m_dim = x.shape
    assert k_dim == k2, (k_dim, k2)

    tm = m_dim if m_dim <= _TILE_M else _TILE_M
    tk = k_dim if k_dim <= _TILE_K else _TILE_K
    mp = m_dim if tm == m_dim else _round_up(m_dim, tm)
    kp = k_dim if tk == k_dim else _round_up(k_dim, tk)
    if mp != m_dim:
        x = jnp.pad(x, ((0, 0), (0, mp - m_dim)))
    if kp != k_dim:
        x = jnp.pad(x, ((0, kp - k_dim), (0, 0)))
        w = jnp.pad(w, ((0, 0), (0, kp - k_dim)))

    out = pl.pallas_call(
        functools.partial(_dense_t_kernel, activation=activation),
        out_shape=jax.ShapeDtypeStruct((oc, mp), jnp.float32),
        grid=(mp // tm, kp // tk),
        in_specs=[
            pl.BlockSpec((oc, tk), lambda j, k: (0, k)),   # weights
            pl.BlockSpec((tk, tm), lambda j, k: (k, j)),   # patches
            pl.BlockSpec((oc, 1), lambda j, k: (0, 0)),    # bias
        ],
        out_specs=pl.BlockSpec((oc, tm), lambda j, k: (0, j)),
        scratch_shapes=[pltpu.VMEM((oc, tm), jnp.float32)],
        compiler_params=pltpu.CompilerParams(
            dimension_semantics=("parallel", "arbitrary"),
            vmem_limit_bytes=_VMEM_LIMIT,
        ),
    )(w, x, b)
    return out if mp == m_dim else out[:, :m_dim]


# --------------------------------------------------------------------------
# Fused tail kernel: last 4x4 conv + 1x1 conv + cond MLP + ffnn + sigmoid
# (everything is tiny after the first conv -> one launch, VMEM-resident)
# --------------------------------------------------------------------------
def _tail_kernel(p_ref, w4_ref, b4_ref, w1_ref, b1_ref, cond_ref,
                 wc1_ref, bc1_ref, wc2_ref, bc2_ref,
                 wfa_ref, wfb_ref, bff_ref, o_ref, *, n_batch, hwf):
    lrelu = lambda v: jnp.where(v > 0, v, jnp.float32(0.2) * v)

    # last 4x4 / stride-4 conv (matmul on pre-gathered patches) + LeakyReLU
    y = lrelu(jnp.dot(w4_ref[...], p_ref[...],
                      preferred_element_type=jnp.float32) + b4_ref[...])    # (C, N*hwf)
    # 1x1 conv + LeakyReLU
    y = lrelu(jnp.dot(w1_ref[...], y,
                      preferred_element_type=jnp.float32) + b1_ref[...])    # (1, N*hwf)

    # conv features, feature-major (hwf, N); columns of y are (n, oh, ow)-ordered
    if hwf == 1:
        flat_t = y                                     # already (1, N)
    else:
        flat_t = y.reshape(n_batch, hwf).T             # tiny XLU transpose

    # conditioning MLP, feature-major so batch stays on the lane axis
    c = lrelu(jnp.dot(wc1_ref[...], cond_ref[...],
                      preferred_element_type=jnp.float32) + bc1_ref[...])   # (mid, N)
    c = lrelu(jnp.dot(wc2_ref[...], c,
                      preferred_element_type=jnp.float32) + bc2_ref[...])   # (hwf, N)

    # ffnn over concat([flat, cond]) folded into two feature reductions
    logits = (jnp.sum(wfa_ref[...] * flat_t, axis=0, keepdims=True)
              + jnp.sum(wfb_ref[...] * c, axis=0, keepdims=True)
              + bff_ref[...])                                               # (1, N)

    # numerically stable sigmoid on the EUP (no exp(-x) overflow)
    o_ref[...] = (0.5 * (jnp.tanh(0.5 * logits) + 1.0)).astype(o_ref.dtype)


def tail_fused(p_last, w4, b4, w1, b1, cond_t, wc1, bc1, wc2, bc2,
               wfa, wfb, bff, *, n_batch, hwf):
    ins = [p_last, w4, b4, w1, b1, cond_t, wc1, bc1, wc2, bc2, wfa, wfb, bff]
    return pl.pallas_call(
        functools.partial(_tail_kernel, n_batch=n_batch, hwf=hwf),
        out_shape=jax.ShapeDtypeStruct((1, n_batch), jnp.float32),
        grid=(1,),
        in_specs=[_full_spec(a.shape) for a in ins],
        out_specs=_full_spec((1, n_batch)),
        compiler_params=pltpu.CompilerParams(
            dimension_semantics=("arbitrary",),
            vmem_limit_bytes=_VMEM_LIMIT,
        ),
    )(*ins)


# --------------------------------------------------------------------------
# im2col glue (transposed / lane-dense orientation)
# --------------------------------------------------------------------------
def _im2col_t(x, dtype):
    """x: (C, N, H, W) -> (C*16, N*(H//4)*(W//4)).  Rows ordered (c, kh, kw),
    columns ordered (n, oh, ow).  Crops like Conv2d(4, stride=4, padding=0)."""
    c, n, h, w = x.shape
    oh, ow = h // 4, w // 4
    x = x[:, :, : oh * 4, : ow * 4]
    p = x.reshape(c, n, oh, 4, ow, 4).transpose(0, 3, 5, 1, 2, 4)
    return p.reshape(c * 16, n * oh * ow).astype(dtype)


# --------------------------------------------------------------------------
# Parameter init (deterministic, PyTorch-like uniform bounds)
# --------------------------------------------------------------------------
def init_informed_dcnn(key, h, w, in_c, n_conditions, min_c=8, max_c=128):
    params = {"convs4": [], "inp_shape": (in_c, h, w), "n_conditions": n_conditions}
    c, hh, ww = in_c, h, w
    next_c = lambda cc: min_c if cc == in_c else min(max_c, cc * 2)

    while min(hh, ww) >= 4:
        nc = next_c(c)
        key, k1, k2 = jax.random.split(key, 3)
        bound = 1.0 / (c * 16) ** 0.5
        params["convs4"].append({
            # (OC, C*16); the matching patch-matrix rows are (c, kh, kw)-ordered
            "w": jax.random.uniform(k1, (nc, c * 16), jnp.float32, -bound, bound),
            "b": jax.random.uniform(k2, (nc, 1), jnp.float32, -bound, bound),
        })
        c, hh, ww = nc, hh // 4, ww // 4

    key, k1, k2 = jax.random.split(key, 3)
    bound = 1.0 / c ** 0.5
    params["conv1x1"] = {
        "w": jax.random.uniform(k1, (1, c), jnp.float32, -bound, bound),
        "b": jax.random.uniform(k2, (1, 1), jnp.float32, -bound, bound),
    }

    hwf = hh * ww
    mid = (n_conditions + hwf) // 2
    key, k1, k2, k3, k4 = jax.random.split(key, 5)
    b1 = 1.0 / n_conditions ** 0.5
    params["cond1"] = {
        "w_t": jax.random.uniform(k1, (mid, n_conditions), jnp.float32, -b1, b1),
        "b": jax.random.uniform(k2, (mid, 1), jnp.float32, -b1, b1),
    }
    b2 = 1.0 / mid ** 0.5
    params["cond2"] = {
        "w_t": jax.random.uniform(k3, (hwf, mid), jnp.float32, -b2, b2),
        "b": jax.random.uniform(k4, (hwf, 1), jnp.float32, -b2, b2),
    }

    key, k1, k2 = jax.random.split(key, 3)
    b3 = 1.0 / (2 * hwf) ** 0.5
    wf = jax.random.uniform(k1, (2 * hwf, 1), jnp.float32, -b3, b3)
    params["ffnn"] = {
        "w_a": wf[:hwf],                       # multiplies the conv features
        "w_b": wf[hwf:],                       # multiplies the cond features
        "b": jax.random.uniform(k2, (1, 1), jnp.float32, -b3, b3),
    }
    params["hwf"] = hwf
    return params


# --------------------------------------------------------------------------
# Forward pass (mirrors Informed_DCNN.forward)
# --------------------------------------------------------------------------
def informed_dcnn_forward(params, inp, conditions):
    n, c, h, w = inp.shape
    assert (c, h, w) == params["inp_shape"], (c, h, w)
    assert conditions.shape == (n, params["n_conditions"])
    convs4 = params["convs4"]
    # TODO(synk): inputs with min(h, w) < 4 (zero 4x4 convs) need a tail-only variant.
    assert len(convs4) >= 1, "min(h, w) < 4 not supported by this kernel"

    x = jnp.transpose(inp, (1, 0, 2, 3))                       # (C, N, H, W)

    # all but the last 4x4 conv: tiled lane-dense Pallas matmul (bf16 MXU)
    for layer in convs4[:-1]:
        oc = layer["w"].shape[0]
        oh, ow = x.shape[2] // 4, x.shape[3] // 4
        p = _im2col_t(x, jnp.bfloat16)
        y = dense_t(layer["w"].astype(jnp.bfloat16), p, layer["b"], "leaky_relu")
        x = y.reshape(oc, n, oh, ow)

    # fused tail: last 4x4 conv + 1x1 conv + cond MLP + concat/ffnn + sigmoid
    last = convs4[-1]
    p_last = _im2col_t(x, jnp.float32)
    out = tail_fused(
        p_last, last["w"], last["b"],
        params["conv1x1"]["w"], params["conv1x1"]["b"],
        jnp.transpose(conditions, (1, 0)),
        params["cond1"]["w_t"], params["cond1"]["b"],
        params["cond2"]["w_t"], params["cond2"]["b"],
        params["ffnn"]["w_a"], params["ffnn"]["w_b"], params["ffnn"]["b"],
        n_batch=n, hwf=params["hwf"],
    )
    return out.reshape(n, 1)


# --------------------------------------------------------------------------
# Pure-JAX reference (f32) for a correctness sanity check
# --------------------------------------------------------------------------
def _reference_forward(params, inp, conditions):
    n = inp.shape[0]
    x = inp
    for layer in params["convs4"]:
        oc = layer["w"].shape[0]
        w4 = layer["w"].reshape(oc, -1, 4, 4)
        x = jax.lax.conv_general_dilated(
            x, w4, window_strides=(4, 4), padding="VALID",
            dimension_numbers=("NCHW", "OIHW", "NCHW"))
        x = x + layer["b"].reshape(1, oc, 1, 1)
        x = jnp.where(x > 0, x, 0.2 * x)
    x = jnp.einsum("nchw,oc->nohw", x, params["conv1x1"]["w"])
    x = x + params["conv1x1"]["b"].reshape(1, 1, 1, 1)
    x = jnp.where(x > 0, x, 0.2 * x)
    flat = x.reshape(n, -1)
    cnd = conditions
    cnd = cnd @ params["cond1"]["w_t"].T + params["cond1"]["b"].T
    cnd = jnp.where(cnd > 0, cnd, 0.2 * cnd)
    cnd = cnd @ params["cond2"]["w_t"].T + params["cond2"]["b"].T
    cnd = jnp.where(cnd > 0, cnd, 0.2 * cnd)
    logits = flat @ params["ffnn"]["w_a"] + cnd @ params["ffnn"]["w_b"] + params["ffnn"]["b"]
    return jax.nn.sigmoid(logits)


# --------------------------------------------------------------------------
if __name__ == "__main__":
    # Small shapes consistent with the module: h=w=16, in_c=4, n_conditions=8
    H, W, IN_C, N_COND = 16, 16, 4, 8
    BATCH = 2

    key = jax.random.PRNGKey(0)
    kx, kc, kp = jax.random.split(key, 3)
    x = jax.random.normal(kx, (BATCH, IN_C, H, W), jnp.float32)
    conditions = jax.random.normal(kc, (BATCH, N_COND), jnp.float32)

    params = init_informed_dcnn(kp, H, W, IN_C, N_COND)

    fwd = jax.jit(functools.partial(informed_dcnn_forward, params))
    out = jax.block_until_ready(fwd(x, conditions))

    assert out.shape == (BATCH, 1), out.shape
    assert bool(jnp.all(jnp.isfinite(out)))
    assert bool(jnp.all((out >= 0.0) & (out <= 1.0)))

    # sanity check vs. a pure-JAX f32 reference (first-conv matmul is bf16)
    ref = _reference_forward(params, x, conditions)
    assert bool(jnp.allclose(out, ref, atol=5e-2)), (out, ref)

    print("KERNEL_OK")
</pallas_src>

<mosaic_0001>
module attributes {stable_mosaic.version = 11 : i64} {
  func.func @_dense_t_kernel(%arg0: i32, %arg1: i32, %arg2: memref<8x64xbf16, #tpu.memory_space<vmem>>, %arg3: memref<64x32xbf16, #tpu.memory_space<vmem>>, %arg4: memref<8x1xf32, #tpu.memory_space<vmem>>, %arg5: memref<8x32xf32, #tpu.memory_space<vmem>>, %arg6: memref<8x32xf32, #tpu.memory_space<vmem>>) attributes {dimension_semantics = [#tpu.dimension_semantics<parallel>, #tpu.dimension_semantics<arbitrary>], iteration_bounds = array<i64: 1, 1>, scalar_prefetch = 0 : i64, scratch_operands = 1 : i64, tpu.core_type = #tpu.core_type<tc>, window_params = [{transform_indices = @transform_0, window_bounds = array<i64: 8, 64>}, {transform_indices = @transform_1, window_bounds = array<i64: 64, 32>}, {pipeline_mode = #tpu.pipeline_mode<synchronous>, transform_indices = @transform_2, window_bounds = array<i64: 8, 1>}, {transform_indices = @transform_3, window_bounds = array<i64: 8, 32>}]} {
    %c0_i32 = arith.constant 0 : i32
    %0 = arith.cmpi eq, %arg1, %c0_i32 : i32
    %1 = arith.extui %0 : i1 to i32
    %c0_i32_0 = arith.constant 0 : i32
    %2 = arith.cmpi ne, %1, %c0_i32_0 : i32
    scf.if %2 {
      %cst_10 = arith.constant 0.000000e+00 : f32
      %12 = vector.broadcast %cst_10 : f32 to vector<8x32xf32>
      %c0_11 = arith.constant 0 : index
      %c0_12 = arith.constant 0 : index
      %13 = vector.load %arg6[%c0_11, %c0_12] : memref<8x32xf32, #tpu.memory_space<vmem>>, vector<8x32xf32>
      tpu.vector_store %arg6[%c0_11, %c0_12], %12 {strides = array<i32>} : memref<8x32xf32, #tpu.memory_space<vmem>>, vector<8x32xf32>,
    } else {
    }
    %c0 = arith.constant 0 : index
    %c0_1 = arith.constant 0 : index
    %3 = vector.load %arg6[%c0, %c0_1] : memref<8x32xf32, #tpu.memory_space<vmem>>, vector<8x32xf32>
    %c0_2 = arith.constant 0 : index
    %c0_3 = arith.constant 0 : index
    %4 = vector.load %arg2[%c0_2, %c0_3] : memref<8x64xbf16, #tpu.memory_space<vmem>>, vector<8x64xbf16>
    %c0_4 = arith.constant 0 : index
    %c0_5 = arith.constant 0 : index
    %5 = vector.load %arg3[%c0_4, %c0_5] : memref<64x32xbf16, #tpu.memory_space<vmem>>, vector<64x32xbf16>
    %cst = arith.constant dense<0.000000e+00> : vector<8x32xf32>
    %6 = tpu.matmul %4, %5, %cst {dimension_numbers = #tpu.dot_dimension_numbers<[1], [0], [0], [1], [0, 0, 1, 1], [], []>} : vector<8x64xbf16>, vector<64x32xbf16>, vector<8x32xf32> -> vector<8x32xf32>
    %7 = arith.addf %3, %6 : vector<8x32xf32>
    %c0_6 = arith.constant 0 : index
    %c0_7 = arith.constant 0 : index
    %8 = vector.load %arg6[%c0_6, %c0_7] : memref<8x32xf32, #tpu.memory_space<vmem>>, vector<8x32xf32>
    tpu.vector_store %arg6[%c0_6, %c0_7], %7 {strides = array<i32>} : memref<8x32xf32, #tpu.memory_space<vmem>>, vector<8x32xf32>,
    %c0_i32_8 = arith.constant 0 : i32
    %9 = arith.cmpi eq, %arg1, %c0_i32_8 : i32
    %10 = arith.extui %9 : i1 to i32
    %c0_i32_9 = arith.constant 0 : i32
    %11 = arith.cmpi ne, %10, %c0_i32_9 : i32
    scf.if %11 {
      %c0_10 = arith.constant 0 : index
      %c0_11 = arith.constant 0 : index
      %12 = vector.load %arg6[%c0_10, %c0_11] : memref<8x32xf32, #tpu.memory_space<vmem>>, vector<8x32xf32>
      %c0_12 = arith.constant 0 : index
      %c0_13 = arith.constant 0 : index
      %13 = vector.load %arg4[%c0_12, %c0_13] : memref<8x1xf32, #tpu.memory_space<vmem>>, vector<8x1xf32>
      %14 = vector.broadcast %13 : vector<8x1xf32> to vector<8x32xf32>
      %15 = arith.addf %12, %14 : vector<8x32xf32>
      %cst_14 = arith.constant 0.000000e+00 : f32
      %16 = vector.broadcast %cst_14 : f32 to vector<8x32xf32>
      %17 = arith.cmpf ogt, %15, %16 : vector<8x32xf32>
      %cst_15 = arith.constant 2.000000e-01 : f32
      %18 = vector.broadcast %cst_15 : f32 to vector<8x32xf32>
      %19 = arith.mulf %18, %15 : vector<8x32xf32>
      %20 = arith.select %17, %15, %19 : vector<8x32xi1>, vector<8x32xf32>
      %c0_16 = arith.constant 0 : index
      %c0_17 = arith.constant 0 : index
      %21 = vector.load %arg5[%c0_16, %c0_17] : memref<8x32xf32, #tpu.memory_space<vmem>>, vector<8x32xf32>
      tpu.vector_store %arg5[%c0_16, %c0_17], %20 {strides = array<i32>} : memref<8x32xf32, #tpu.memory_space<vmem>>, vector<8x32xf32>,
    } else {
    }
    return
  }
  func.func @transform_0(%arg0: i32, %arg1: i32) -> (i32, i32) {
    %c0_i32 = arith.constant 0 : i32
    %c0_i32_0 = arith.constant 0 : i32
    return %c0_i32, %arg1 : i32, i32
  }
  func.func @transform_1(%arg0: i32, %arg1: i32) -> (i32, i32) {
    %c0_i32 = arith.constant 0 : i32
    return %arg1, %arg0 : i32, i32
  }
  func.func @transform_2(%arg0: i32, %arg1: i32) -> (i32, i32) {
    %c0_i32 = arith.constant 0 : i32
    %c0_i32_0 = arith.constant 0 : i32
    %c0_i32_1 = arith.constant 0 : i32
    return %c0_i32, %c0_i32_0 : i32, i32
  }
  func.func @transform_3(%arg0: i32, %arg1: i32) -> (i32, i32) {
    %c0_i32 = arith.constant 0 : i32
    %c0_i32_0 = arith.constant 0 : i32
    return %c0_i32, %arg0 : i32, i32
  }
}

module attributes {stable_mosaic.version = 11 : i64} {
  func.func @_tail_kernel(%arg0: i32, %arg1: memref<128x2xf32, #tpu.memory_space<vmem>>, %arg2: memref<16x128xf32, #tpu.memory_space<vmem>>, %arg3: memref<16x1xf32, #tpu.memory_space<vmem>>, %arg4: memref<1x16xf32, #tpu.memory_space<vmem>>, %arg5: memref<1x1xf32, #tpu.memory_space<vmem>>, %arg6: memref<8x2xf32, #tpu.memory_space<vmem>>, %arg7: memref<4x8xf32, #tpu.memory_space<vmem>>, %arg8: memref<4x1xf32, #tpu.memory_space<vmem>>, %arg9: memref<1x4xf32, #tpu.memory_space<vmem>>, %arg10: memref<1x1xf32, #tpu.memory_space<vmem>>, %arg11: memref<1x1xf32, #tpu.memory_space<vmem>>, %arg12: memref<1x1xf32, #tpu.memory_space<vmem>>, %arg13: memref<1x1xf32, #tpu.memory_space<vmem>>, %arg14: memref<1x2xf32, #tpu.memory_space<vmem>>) attributes {dimension_semantics = [#tpu.dimension_semantics<arbitrary>], iteration_bounds = array<i64: 1>, scalar_prefetch = 0 : i64, scratch_operands = 0 : i64, tpu.core_type = #tpu.core_type<tc>, window_params = [{pipeline_mode = #tpu.pipeline_mode<synchronous>, transform_indices = @transform_0, window_bounds = array<i64: 128, 2>}, {pipeline_mode = #tpu.pipeline_mode<synchronous>, transform_indices = @transform_1, window_bounds = array<i64: 16, 128>}, {pipeline_mode = #tpu.pipeline_mode<synchronous>, transform_indices = @transform_2, window_bounds = array<i64: 16, 1>}, {pipeline_mode = #tpu.pipeline_mode<synchronous>, transform_indices = @transform_3, window_bounds = array<i64: 1, 16>}, {pipeline_mode = #tpu.pipeline_mode<synchronous>, transform_indices = @transform_4, window_bounds = array<i64: 1, 1>}, {pipeline_mode = #tpu.pipeline_mode<synchronous>, transform_indices = @transform_5, window_bounds = array<i64: 8, 2>}, {pipeline_mode = #tpu.pipeline_mode<synchronous>, transform_indices = @transform_6, window_bounds = array<i64: 4, 8>}, {pipeline_mode = #tpu.pipeline_mode<synchronous>, transform_indices = @transform_7, window_bounds = array<i64: 4, 1>}, {pipeline_mode = #tpu.pipeline_mode<synchronous>, transform_indices = @transform_8, window_bounds = array<i64: 1, 4>}, {pipeline_mode = #tpu.pipeline_mode<synchronous>, transform_indices = @transform_9, window_bounds = array<i64: 1, 1>}, {pipeline_mode = #tpu.pipeline_mode<synchronous>, transform_indices = @transform_10, window_bounds = array<i64: 1, 1>}, {pipeline_mode = #tpu.pipeline_mode<synchronous>, transform_indices = @transform_11, window_bounds = array<i64: 1, 1>}, {pipeline_mode = #tpu.pipeline_mode<synchronous>, transform_indices = @transform_12, window_bounds = array<i64: 1, 1>}, {pipeline_mode = #tpu.pipeline_mode<synchronous>, transform_indices = @transform_13, window_bounds = array<i64: 1, 2>}]} {
    %c0 = arith.constant 0 : index
    %c0_0 = arith.constant 0 : index
    %0 = vector.load %arg2[%c0, %c0_0] : memref<16x128xf32, #tpu.memory_space<vmem>>, vector<16x128xf32>
    %c0_1 = arith.constant 0 : index
    %c0_2 = arith.constant 0 : index
    %1 = vector.load %arg1[%c0_1, %c0_2] : memref<128x2xf32, #tpu.memory_space<vmem>>, vector<128x2xf32>
    %cst = arith.constant dense<0.000000e+00> : vector<16x2xf32>
    %2 = tpu.matmul %0, %1, %cst {dimension_numbers = #tpu.dot_dimension_numbers<[1], [0], [0], [1], [0, 0, 1, 1], [], []>} : vector<16x128xf32>, vector<128x2xf32>, vector<16x2xf32> -> vector<16x2xf32>
    %c0_3 = arith.constant 0 : index
    %c0_4 = arith.constant 0 : index
    %3 = vector.load %arg3[%c0_3, %c0_4] : memref<16x1xf32, #tpu.memory_space<vmem>>, vector<16x1xf32>
    %4 = vector.broadcast %3 : vector<16x1xf32> to vector<16x2xf32>
    %5 = arith.addf %2, %4 : vector<16x2xf32>
    %cst_5 = arith.constant 0.000000e+00 : f32
    %6 = vector.broadcast %cst_5 : f32 to vector<16x2xf32>
    %7 = arith.cmpf ogt, %5, %6 : vector<16x2xf32>
    %cst_6 = arith.constant 2.000000e-01 : f32
    %8 = vector.broadcast %cst_6 : f32 to vector<16x2xf32>
    %9 = arith.mulf %8, %5 : vector<16x2xf32>
    %10 = arith.select %7, %5, %9 : vector<16x2xi1>, vector<16x2xf32>
    %c0_7 = arith.constant 0 : index
    %c0_8 = arith.constant 0 : index
    %11 = vector.load %arg4[%c0_7, %c0_8] : memref<1x16xf32, #tpu.memory_space<vmem>>, vector<1x16xf32>
    %cst_9 = arith.constant dense<0.000000e+00> : vector<1x2xf32>
    %12 = tpu.matmul %11, %10, %cst_9 {dimension_numbers = #tpu.dot_dimension_numbers<[1], [0], [0], [1], [0, 0, 1, 1], [], []>} : vector<1x16xf32>, vector<16x2xf32>, vector<1x2xf32> -> vector<1x2xf32>
    %c0_10 = arith.constant 0 : index
    %c0_11 = arith.constant 0 : index
    %13 = vector.load %arg5[%c0_10, %c0_11] : memref<1x1xf32, #tpu.memory_space<vmem>>, vector<1x1xf32>
    %14 = vector.broadcast %13 : vector<1x1xf32> to vector<1x2xf32>
    %15 = arith.addf %12, %14 : vector<1x2xf32>
    %cst_12 = arith.constant 0.000000e+00 : f32
    %16 = vector.broadcast %cst_12 : f32 to vector<1x2xf32>
    %17 = arith.cmpf ogt, %15, %16 : vector<1x2xf32>
    %cst_13 = arith.constant 2.000000e-01 : f32
    %18 = vector.broadcast %cst_13 : f32 to vector<1x2xf32>
    %19 = arith.mulf %18, %15 : vector<1x2xf32>
    %20 = arith.select %17, %15, %19 : vector<1x2xi1>, vector<1x2xf32>
    %c0_14 = arith.constant 0 : index
    %c0_15 = arith.constant 0 : index
    %21 = vector.load %arg7[%c0_14, %c0_15] : memref<4x8xf32, #tpu.memory_space<vmem>>, vector<4x8xf32>
    %c0_16 = arith.constant 0 : index
    %c0_17 = arith.constant 0 : index
    %22 = vector.load %arg6[%c0_16, %c0_17] : memref<8x2xf32, #tpu.memory_space<vmem>>, vector<8x2xf32>
    %cst_18 = arith.constant dense<0.000000e+00> : vector<4x2xf32>
    %23 = tpu.matmul %21, %22, %cst_18 {dimension_numbers = #tpu.dot_dimension_numbers<[1], [0], [0], [1], [0, 0, 1, 1], [], []>} : vector<4x8xf32>, vector<8x2xf32>, vector<4x2xf32> -> vector<4x2xf32>
    %c0_19 = arith.constant 0 : index
    %c0_20 = arith.constant 0 : index
    %24 = vector.load %arg8[%c0_19, %c0_20] : memref<4x1xf32, #tpu.memory_space<vmem>>, vector<4x1xf32>
    %25 = vector.broadcast %24 : vector<4x1xf32> to vector<4x2xf32>
    %26 = arith.addf %23, %25 : vector<4x2xf32>
    %cst_21 = arith.constant 0.000000e+00 : f32
    %27 = vector.broadcast %cst_21 : f32 to vector<4x2xf32>
    %28 = arith.cmpf ogt, %26, %27 : vector<4x2xf32>
    %cst_22 = arith.constant 2.000000e-01 : f32
    %29 = vector.broadcast %cst_22 : f32 to vector<4x2xf32>
    %30 = arith.mulf %29, %26 : vector<4x2xf32>
    %31 = arith.select %28, %26, %30 : vector<4x2xi1>, vector<4x2xf32>
    %c0_23 = arith.constant 0 : index
    %c0_24 = arith.constant 0 : index
    %32 = vector.load %arg9[%c0_23, %c0_24] : memref<1x4xf32, #tpu.memory_space<vmem>>, vector<1x4xf32>
    %cst_25 = arith.constant dense<0.000000e+00> : vector<1x2xf32>
    %33 = tpu.matmul %32, %31, %cst_25 {dimension_numbers = #tpu.dot_dimension_numbers<[1], [0], [0], [1], [0, 0, 1, 1], [], []>} : vector<1x4xf32>, vector<4x2xf32>, vector<1x2xf32> -> vector<1x2xf32>
    %c0_26 = arith.constant 0 : index
    %c0_27 = arith.constant 0 : index
    %34 = vector.load %arg10[%c0_26, %c0_27] : memref<1x1xf32, #tpu.memory_space<vmem>>, vector<1x1xf32>
    %35 = vector.broadcast %34 : vector<1x1xf32> to vector<1x2xf32>
    %36 = arith.addf %33, %35 : vector<1x2xf32>
    %cst_28 = arith.constant 0.000000e+00 : f32
    %37 = vector.broadcast %cst_28 : f32 to vector<1x2xf32>
    %38 = arith.cmpf ogt, %36, %37 : vector<1x2xf32>
    %cst_29 = arith.constant 2.000000e-01 : f32
    %39 = vector.broadcast %cst_29 : f32 to vector<1x2xf32>
    %40 = arith.mulf %39, %36 : vector<1x2xf32>
    %41 = arith.select %38, %36, %40 : vector<1x2xi1>, vector<1x2xf32>
    %c0_30 = arith.constant 0 : index
    %c0_31 = arith.constant 0 : index
    %42 = vector.load %arg11[%c0_30, %c0_31] : memref<1x1xf32, #tpu.memory_space<vmem>>, vector<1x1xf32>
    %43 = vector.broadcast %42 : vector<1x1xf32> to vector<1x2xf32>
    %44 = arith.mulf %43, %20 : vector<1x2xf32>
    %cst_32 = arith.constant dense<0.000000e+00> : vector<2xf32>
    %45 = vector.multi_reduction <add>, %44, %cst_32 [0] : vector<1x2xf32> to vector<2xf32>
    %46 = vector.shape_cast %45 : vector<2xf32> to vector<1x2xf32>
    %c0_33 = arith.constant 0 : index
    %c0_34 = arith.constant 0 : index
    %47 = vector.load %arg12[%c0_33, %c0_34] : memref<1x1xf32, #tpu.memory_space<vmem>>, vector<1x1xf32>
    %48 = vector.broadcast %47 : vector<1x1xf32> to vector<1x2xf32>
    %49 = arith.mulf %48, %41 : vector<1x2xf32>
    %cst_35 = arith.constant dense<0.000000e+00> : vector<2xf32>
    %50 = vector.multi_reduction <add>, %49, %cst_35 [0] : vector<1x2xf32> to vector<2xf32>
    %51 = vector.shape_cast %50 : vector<2xf32> to vector<1x2xf32>
    %52 = arith.addf %46, %51 : vector<1x2xf32>
    %c0_36 = arith.constant 0 : index
    %c0_37 = arith.constant 0 : index
    %53 = vector.load %arg13[%c0_36, %c0_37] : memref<1x1xf32, #tpu.memory_space<vmem>>, vector<1x1xf32>
    %54 = vector.broadcast %53 : vector<1x1xf32> to vector<1x2xf32>
    %55 = arith.addf %52, %54 : vector<1x2xf32>
    %cst_38 = arith.constant 5.000000e-01 : f32
    %56 = vector.broadcast %cst_38 : f32 to vector<1x2xf32>
    %57 = arith.mulf %56, %55 : vector<1x2xf32>
    %58 = math.tanh %57 : vector<1x2xf32>
    %cst_39 = arith.constant 1.000000e+00 : f32
    %59 = vector.broadcast %cst_39 : f32 to vector<1x2xf32>
    %60 = arith.addf %58, %59 : vector<1x2xf32>
    %cst_40 = arith.constant 5.000000e-01 : f32
    %61 = vector.broadcast %cst_40 : f32 to vector<1x2xf32>
    %62 = arith.mulf %61, %60 : vector<1x2xf32>
    %c0_41 = arith.constant 0 : index
    %c0_42 = arith.constant 0 : index
    %63 = vector.load %arg14[%c0_41, %c0_42] : memref<1x2xf32, #tpu.memory_space<vmem>>, vector<1x2xf32>
    tpu.vector_store %arg14[%c0_41, %c0_42], %62 {strides = array<i32>} : memref<1x2xf32, #tpu.memory_space<vmem>>, vector<1x2xf32>,
    return
  }
  func.func @transform_0(%arg0: i32) -> (i32, i32) {
    %c0_i32 = arith.constant 0 : i32
    %c0_i32_0 = arith.constant 0 : i32
    %c0_i32_1 = arith.constant 0 : i32
    return %c0_i32, %c0_i32_0 : i32, i32
  }
  func.func @transform_1(%arg0: i32) -> (i32, i32) {
    %c0_i32 = arith.constant 0 : i32
    %c0_i32_0 = arith.constant 0 : i32
    %c0_i32_1 = arith.constant 0 : i32
    return %c0_i32, %c0_i32_0 : i32, i32
  }
  func.func @transform_2(%arg0: i32) -> (i32, i32) {
    %c0_i32 = arith.constant 0 : i32
    %c0_i32_0 = arith.constant 0 : i32
    %c0_i32_1 = arith.constant 0 : i32
    return %c0_i32, %c0_i32_0 : i32, i32
  }
  func.func @transform_3(%arg0: i32) -> (i32, i32) {
    %c0_i32 = arith.constant 0 : i32
    %c0_i32_0 = arith.constant 0 : i32
    %c0_i32_1 = arith.constant 0 : i32
    return %c0_i32, %c0_i32_0 : i32, i32
  }
  func.func @transform_4(%arg0: i32) -> (i32, i32) {
    %c0_i32 = arith.constant 0 : i32
    %c0_i32_0 = arith.constant 0 : i32
    %c0_i32_1 = arith.constant 0 : i32
    return %c0_i32, %c0_i32_0 : i32, i32
  }
  func.func @transform_5(%arg0: i32) -> (i32, i32) {
    %c0_i32 = arith.constant 0 : i32
    %c0_i32_0 = arith.constant 0 : i32
    %c0_i32_1 = arith.constant 0 : i32
    return %c0_i32, %c0_i32_0 : i32, i32
  }
  func.func @transform_6(%arg0: i32) -> (i32, i32) {
    %c0_i32 = arith.constant 0 : i32
    %c0_i32_0 = arith.constant 0 : i32
    %c0_i32_1 = arith.constant 0 : i32
    return %c0_i32, %c0_i32_0 : i32, i32
  }
  func.func @transform_7(%arg0: i32) -> (i32, i32) {
    %c0_i32 = arith.constant 0 : i32
    %c0_i32_0 = arith.constant 0 : i32
    %c0_i32_1 = arith.constant 0 : i32
    return %c0_i32, %c0_i32_0 : i32, i32
  }
  func.func @transform_8(%arg0: i32) -> (i32, i32) {
    %c0_i32 = arith.constant 0 : i32
    %c0_i32_0 = arith.constant 0 : i32
    %c0_i32_1 = arith.constant 0 : i32
    return %c0_i32, %c0_i32_0 : i32, i32
  }
  func.func @transform_9(%arg0: i32) -> (i32, i32) {
    %c0_i32 = arith.constant 0 : i32
    %c0_i32_0 = arith.constant 0 : i32
    %c0_i32_1 = arith.constant 0 : i32
    return %c0_i32, %c0_i32_0 : i32, i32
  }
  func.func @transform_10(%arg0: i32) -> (i32, i32) {
    %c0_i32 = arith.constant 0 : i32
    %c0_i32_0 = arith.constant 0 : i32
    %c0_i32_1 = arith.constant 0 : i32
    return %c0_i32, %c0_i32_0 : i32, i32
  }
  func.func @transform_11(%arg0: i32) -> (i32, i32) {
    %c0_i32 = arith.constant 0 : i32
    %c0_i32_0 = arith.constant 0 : i32
    %c0_i32_1 = arith.constant 0 : i32
    return %c0_i32, %c0_i32_0 : i32, i32
  }
  func.func @transform_12(%arg0: i32) -> (i32, i32) {
    %c0_i32 = arith.constant 0 : i32
    %c0_i32_0 = arith.constant 0 : i32
    %c0_i32_1 = arith.constant 0 : i32
    return %c0_i32, %c0_i32_0 : i32, i32
  }
  func.func @transform_13(%arg0: i32) -> (i32, i32) {
    %c0_i32 = arith.constant 0 : i32
    %c0_i32_0 = arith.constant 0 : i32
    %c0_i32_1 = arith.constant 0 : i32
    return %c0_i32, %c0_i32_0 : i32, i32
  }
}

</mosaic_0001>

<bundles_post_ra>
// kernel: informed_dcnn_forward.2
= control target key start
LH: loop header
LB: loop body
LE: loop exit
PB: predicated region body
PF: predicated region fallthrough
CT: control target
= control target key end

     0   :  { %v151_v0 = vmov 0.0   ;;  %vm152_vm0 = vmmov 0   ;;  %vm19_vm1 = vcmask 261120   ;;  %v153_v2 = vmov 0   ;;  %s198_s1 = inlined_call_operand.vmem [shape: bf16[64,32], index: 1, kind: input, shape index: {}]   ;;  %s199_s2 = inlined_call_operand.vmem [shape: f32[8,1], index: 2, kind: input, shape index: {}]   ;;  %s200_s0 = inlined_call_operand.vmem [shape: bf16[8,64], index: 0, kind: input, shape index: {}]   ;;  %s201_s3 = inlined_call_operand.vmem [shape: f32[8,32], index: 3, kind: output, shape index: {}]  }
   0x1   :  { %131 = vmatprep.subr.bf16.mxu0 %v151_v0  ;;  %v147_v1 = vld [vmem:[%s198_s1 + $0x18] sm:$0xff]   ;;  %139 = vmatprep.mubr.msk.bf16.mxu0 %vm152_vm0, %v151_v0  ;;  %20 = vst.msk [vmem:[#allocation2] sm:$0xff] %vm19_vm1, %v151_v0  ;;  %v148_v3 = vld [vmem:[%s198_s1 + $0x10] sm:$0xff]   ;;  %v106_v4 = vld [vmem:[%s199_s2] sm:$0xff]  ;;  %vm55_vm2 = vcmask 523264  }
   0x2   :  { %146 = vset.pattern.permute.xlu0 %v153_v2  ;;  %132 = vmatpush3.bf16.msra.mxu0 %v147_v1  ;;  %v149_v5 = vld [vmem:[%s198_s1 + $0x8] sm:$0xff]   ;;  %v150_v6 = vld [vmem:[%s198_s1] sm:$0xff]  }
   0x3   :  { %133 = vmatprep.subr.bf16.mxu0 %v151_v0  ;;  %109 = vperm.xlu0 %146, %v106_v4   ;;  %v22_v7 = vld [vmem:[%s200_s0] sm:$0xf] }
   0x6   :  { %134 = vmatpush3.bf16.msra.mxu0 %v148_v3 }
   0x7   :  { %135 = vmatprep.subr.bf16.mxu0 %v151_v0 }
   0x8   :  { %v21_v8 = vld [vmem:[#allocation2] sm:$0xff] }
   0xa   :  { %136 = vmatpush3.bf16.msra.mxu0 %v149_v5 }
   0xb   :  { %137 = vmatprep.subr.bf16.mxu0 %v151_v0 }
   0xe   :  { %138 = vmatpush3.bf16.msra.mxu0 %v150_v6 }
  0x11   :  { %140 = vmatmul.mubr.msk.bf16.vlgmr.msra.gmra.mxu0 %vm55_vm2, %v22_v7 }
  0x7e   :  { %v110_v14 = vpop.permute.xlu0 %109 }
  0xd1   :  { %v93_v9 = vpop.f32.mrf.mxu0 }
  0xd2   :  { %v99_v10 = vadd.f32 %v93_v9, %v21_v8 }
  0xd3   :  { %v141_v11 = vpop.f32.mrf.mxu0 }
  0xd4   :  { %101 = vst.msk [vmem:[#allocation2] sm:$0xff] %vm19_vm1, %v99_v10 }
  0xd5   :  { %v96_v12 = vpop.f32.mrf.mxu0 }
  0xd7   :  { %v142_v13 = vpop.f32.mrf.mxu0 }
  0xdb   :  { %v105_v15 = vld [vmem:[#allocation2] sm:$0xff] }
  0xdc   :  { %v112_v16 = vadd.f32 %v110_v14, %v105_v15 }
  0xde   :  { %vm113_vm3 = vcmp.gt.f32.partialorder %v112_v16, 0.0  ;;  %v114_v17 = vmul.f32 0.2, %v112_v16 }
  0xe0   :  { %v115_v18 = vsel %vm113_vm3, %v112_v16, %v114_v17 }
  0xe1   :  { %116 = vst.msk [vmem:[%s201_s3] sm:$0xff] %vm19_vm1, %v115_v18 }

// kernel: informed_dcnn_forward.3
= control target key start
LH: loop header
LB: loop body
LE: loop exit
PB: predicated region body
PF: predicated region fallthrough
CT: control target
= control target key end

     0   :  { %s768_s0 = inlined_call_operand.vmem [shape: f32[128,2], index: 0, kind: input, shape index: {}]   ;;  %s769_s1 = inlined_call_operand.vmem [shape: f32[16,128], index: 1, kind: input, shape index: {}]   ;;  %s770_s2 = inlined_call_operand.vmem [shape: f32[16,1], index: 2, kind: input, shape index: {}]   ;;  %s771_s3 = inlined_call_operand.vmem [shape: f32[1,16], index: 3, kind: input, shape index: {}]   ;;  %s772_s4 = inlined_call_operand.<no memory space> [shape: f32[1,1], index: 4, kind: input, shape index: {}]   ;;  %s773_s5 = inlined_call_operand.vmem [shape: f32[8,2], index: 5, kind: input, shape index: {}]   ;;  %s774_s6 = inlined_call_operand.vmem [shape: f32[4,8], index: 6, kind: input, shape index: {}]   ;;  %s775_s7 = inlined_call_operand.vmem [shape: f32[4,1], index: 7, kind: input, shape index: {}]   ;;  %s776_s8 = inlined_call_operand.vmem [shape: f32[1,4], index: 8, kind: input, shape index: {}]   ;;  %s777_s13 = inlined_call_operand.hbm [shape: f32[1,2], index: 13, kind: output, shape index: {}]   ;;  %s778_s9 = inlined_call_operand.<no memory space> [shape: f32[1,1], index: 9, kind: input, shape index: {}]   ;;  %s779_s10 = inlined_call_operand.<no memory space> [shape: f32[1,1], index: 10, kind: input, shape index: {}]   ;;  %s780_s11 = inlined_call_operand.<no memory space> [shape: f32[1,1], index: 11, kind: input, shape index: {}]   ;;  %s781_s12 = inlined_call_operand.<no memory space> [shape: f32[1,1], index: 12, kind: input, shape index: {}]  }
   0x1   :  { %v18_v0 = vstv %s772_s4  ;;  %v20_v1 = vstv %s778_s9  ;;  %v22_v2 = vstv %s779_s10  ;;  %v24_v3 = vstv %s780_s11 }
   0x2   :  { %19 = vst [vmem:[#allocation2] sm:$0x1] %v18_v0  ;;  %21 = vst [vmem:[#allocation3] sm:$0x1] %v20_v1  ;;  %v26_v4 = vstv %s781_s12 }
   0x3   :  { %23 = vst [vmem:[#allocation4] sm:$0x1] %v22_v2  ;;  %25 = vst [vmem:[#allocation5] sm:$0x1] %v24_v3 }
   0x4   :  { %27 = vst [vmem:[#allocation6] sm:$0x1] %v26_v4 }
   0x5   :  { %v72_v5 = vld [vmem:[%s768_s0 + $0x78] sm:$0xff]  ;;  %v71_v6 = vld [vmem:[%s768_s0 + $0x70] sm:$0xff]  ;;  %v598_v7 = vmov 0   ;;  %v70_v8 = vld [vmem:[%s768_s0 + $0x68] sm:$0xff] }
   0x6   :  { %516 = vmatprep.subr.mxu0 %v72_v5  ;;  %572 = vset.pattern.permute.xlu0 %v598_v7  ;;  %v69_v9 = vld [vmem:[%s768_s0 + $0x60] sm:$0xff]  ;;  %v68_v11 = vld [vmem:[%s768_s0 + $0x58] sm:$0xff]  ;;  %v74_v12 = vld [vmem:[%s770_s2 + $0x8] sm:$0xff] }
   0x7   :  { %517 = vmatpush3.msra.mxu0 %v72_v5  ;;  %573 = vset.pattern.permute.xlu1 %v598_v7  ;;  %v55_v10 = vld [vmem:[%s769_s1] sm:$0xff] }
   0x8   :  { %518 = vmatprep.subr.mxu0 %v71_v6  ;;  %548 = vmatprep.mubr.f32.mxu0 %v55_v10 }
   0x9   :  { %519 = vmatpush3.msra.mxu0 %v71_v6  ;;  %82 = vperm.xlu0 %572, %v74_v12  }
   0xa   :  { %520 = vmatprep.subr.mxu0 %v70_v8 }
   0xb   :  { %521 = vmatpush3.msra.mxu0 %v70_v8 }
   0xc   :  { %522 = vmatprep.subr.mxu0 %v69_v9 }
   0xd   :  { %28 = vsyncpa [#allocation8], 0  ;;  %523 = vmatpush3.msra.mxu0 %v69_v9  ;;  %v67_v13 = vld [vmem:[%s768_s0 + $0x50] sm:$0xff]  ;;  %v73_v14 = vld [vmem:[%s770_s2] sm:$0xff]  ;;  %v599_v28 = vmov 0.0   ;;  %vm600_vm0 = vmmov 0   ;;  %v173_v55 = vlaneseq }
   0xe   :  { %524 = vmatprep.subr.mxu0 %v68_v11  ;;  %v66_v15 = vld [vmem:[%s768_s0 + $0x48] sm:$0xff]  ;;  %77 = vperm.xlu0 %572, %v73_v14   ;;  %v65_v16 = vld [vmem:[%s768_s0 + $0x40] sm:$0xff]  ;;  %v64_v18 = vld [vmem:[%s768_s0 + $0x38] sm:$0xff]  ;;  %vm177_vm3 = vcmask 130048   ;;  %vm262_vm4 = vcmask 64512   ;;  %vm354_vm6 = vcmask 1043456  }
   0xf   :  { %525 = vmatpush3.msra.mxu0 %v68_v11  ;;  %v340_v17 = vld [vmem:[#allocation3] sm:$0x1]  ;;  %v63_v19 = vld [vmem:[%s768_s0 + $0x30] sm:$0xff]  ;;  %v443_v20 = vld [vmem:[#allocation5] sm:$0x1]  ;;  %551 = vmatprep.subr.mxu1 %v599_v28  ;;  %vm350_vm7 = vcmask 31744  }
  0x10   :  { %526 = vmatprep.subr.mxu0 %v67_v13  ;;  %v62_v21 = vld [vmem:[%s768_s0 + $0x28] sm:$0xff]  ;;  %v61_v22 = vld [vmem:[%s768_s0 + $0x20] sm:$0xff]  ;;  %v60_v23 = vld [vmem:[%s768_s0 + $0x18] sm:$0xff]  ;;  %555 = vmatprep.mubr.msk.f32.mxu1 %vm600_vm0, %v599_v28  ;;  %v174_v56 = vshrl.u32 %v173_v55, 7  ;;  %vm471_vm10 = vcmask 8192  }
  0x11   :  { %527 = vmatpush3.msra.mxu0 %v67_v13  ;;  %v59_v24 = vld [vmem:[%s768_s0 + $0x10] sm:$0xff]  ;;  %v58_v25 = vld [vmem:[%s768_s0 + $0x8] sm:$0xff]  ;;  %v57_v26 = vld [vmem:[%s768_s0] sm:$0xff] }
  0x12   :  { %528 = vmatprep.subr.mxu0 %v66_v15  ;;  %343 = vperm.xlu0 %572, %v340_v17   ;;  %v56_v27 = vld [vmem:[%s769_s1 + $0x8] sm:$0xff]  ;;  %v256_v29 = vld [vmem:[%s775_s7] sm:$0xf]  ;;  %v456_v32 = vld [vmem:[#allocation6] sm:$0x1]  ;;  %v175_v57 = vsub.s32 0, %v174_v56 }
  0x13   :  { %529 = vmatpush3.msra.mxu0 %v66_v15  ;;  %259 = vperm.xlu1 %573, %v256_v29   ;;  %v167_v30 = vld [vmem:[#allocation2] sm:$0x1]  ;;  %v431_v31 = vld [vmem:[#allocation4] sm:$0x1] }
  0x14   :  { %530 = vmatprep.subr.mxu0 %v65_v16  ;;  %v166_v42 = vld [vmem:[%s771_s3] sm:$0x1] }
  0x15   :  { %531 = vmatpush3.msra.mxu0 %v65_v16  ;;  %v255_v44 = vld [vmem:[%s773_s5] sm:$0xff] }
  0x16   :  { %532 = vmatprep.subr.mxu0 %v64_v18  ;;  %446 = vperm.xlu0 %572, %v443_v20   ;;  %v254_v45 = vld [vmem:[%s774_s6] sm:$0xf]  ;;  %s601_s6 = smov [#allocation7]  }
  0x17   :  { %533 = vmatpush3.msra.mxu0 %v64_v18  ;;  %170 = vperm.xlu1 %573, %v167_v30   ;;  %v339_v53 = vld [vmem:[%s776_s8] sm:$0x1]  ;;  %s479_s8 = sshll.u32 %s601_s6, 4  ;;  %s480_s8 = int_to_ptr.vmem [resolvable:$true] %s479_s8 }
  0x18   :  { %534 = vmatprep.subr.mxu0 %v63_v19  ;;  %s576_s4 = scalar_lea.vmem %s480_s8, 16  ;;  %s580_s18 = scalar_lea.vmem %s480_s8, 32 }
  0x19   :  { %535 = vmatpush3.msra.mxu0 %v63_v19  ;;  %p577_p0 = scmp.ne.s32.totalorder %s480_s8, %s576_s4  ;;  %p581_p1 = scmp.lt.s32.totalorder %s480_s8, %s480_s8 }
  0x1a   :  { %536 = vmatprep.subr.mxu0 %v62_v21  ;;  %p582_p2 = scmp.lt.s32.totalorder %s580_s18, %s576_s4 }
  0x1b   :  { %537 = vmatpush3.msra.mxu0 %v62_v21  ;;  %434 = vperm.xlu1 %573, %v431_v31  }
  0x1c   :  { %538 = vmatprep.subr.mxu0 %v61_v22  ;;  %p583_p3 = por %p582_p2, %p581_p1 }
  0x1d   :  { %539 = vmatpush3.msra.mxu0 %v61_v22 }
  0x1e   :  { %540 = vmatprep.subr.mxu0 %v60_v23  ;;  %p584_p4 = pnand %p583_p3, %p577_p0 }
  0x1f   :  { %541 = vmatpush3.msra.mxu0 %v60_v23  ;;  %459 = vperm.xlu1 %573, %v456_v32  }
  0x20   :  { %542 = vmatprep.subr.mxu0 %v59_v24 }
  0x21   :  { %543 = vmatpush3.msra.mxu0 %v59_v24 }
  0x22   :  { %544 = vmatprep.subr.mxu0 %v58_v25 }
  0x23   :  { %545 = vmatpush3.msra.mxu0 %v58_v25 }
  0x24   :  { %546 = vmatprep.subr.mxu0 %v57_v26 }
  0x25   :  { %547 = vmatpush3.msra.mxu0 %v57_v26 }
  0x26   :  { %549 = vmatmul.mubr.f32.vlgmr.msra.gmra.mxu0 %v56_v27 }
  0x84   :  { %v83_v33 = vpop.permute.xlu0 %82 }
  0x89   :  { %v78_v36 = vpop.permute.xlu0 %77 }
  0x8d   :  { %v344_v60 = vpop.permute.xlu0 %343 }
  0x8e   :  { %v260_v48 = vpop.permute.xlu1 %259  ;;  %v349_v62 = vrot.slane %v344_v60, %v175_v57 }
  0x91   :  { %v447_v2 = vpop.permute.xlu0 %446 }
  0x92   :  { %v171_v58 = vpop.permute.xlu1 %170  ;;  %v452_v8 = vrot.slane %v447_v2, %v175_v57 }
  0x93   :  { %v176_v59 = vrot.slane %v171_v58, %v175_v57 }
  0x96   :  { %v435_v63 = vpop.permute.xlu1 %434 }
  0x97   :  { %v440_v4 = vrot.slane %v435_v63, %v175_v57 }
  0x9a   :  { %v460_v9 = vpop.permute.xlu1 %459 }
  0x9b   :  { %v465_v13 = vrot.slane %v460_v9, %v175_v57 }
  0xe6   :  { %v550_v34 = vpop.f32.mrf.mxu0 }
  0xe7   :  { %v157_v35 = vadd.f32 %v550_v34, %v83_v33 }
  0xe8   :  { %v151_v37 = vpop.f32.mrf.mxu0 }
  0xe9   :  { %v152_v38 = vadd.f32 %v151_v37, %v78_v36  ;;  %vm161_vm1 = vcmp.gt.f32.partialorder %v157_v35, 0.0  ;;  %v163_v39 = vmul.f32 0.2, %v157_v35 }
  0xeb   :  { %v162_v40 = vmul.f32 0.2, %v152_v38  ;;  %v165_v41 = vsel %vm161_vm1, %v157_v35, %v163_v39  ;;  %vm160_vm2 = vcmp.gt.f32.partialorder %v152_v38, 0.0 }
  0xec   :  { %552 = vmatpush3.msra.mxu1 %v165_v41 }
  0xed   :  { %553 = vmatprep.subr.mxu1 %v599_v28  ;;  %v164_v43 = vsel %vm160_vm2, %v152_v38, %v162_v40 }
  0xee   :  { %554 = vmatpush3.msra.mxu1 %v164_v43 }
  0xef   :  { %556 = vmatmul.mubr.msk.f32.vlgmr.msra.gmra.mxu1 %vm177_vm3, %v166_v42  ;;  %558 = vmatprep.subr.mxu1 %v599_v28 }
  0xf0   :  { %559 = vmatpush3.msra.mxu1 %v255_v44  ;;  %560 = vmatprep.mubr.msk.f32.mxu1 %vm600_vm0, %v599_v28 }
  0xf1   :  { %563 = vmatprep.subr.mxu1 %v599_v28 }
  0xf3   :  { %561 = vmatmul.mubr.msk.f32.vlgmr.msra.gmra.mxu1 %vm262_vm4, %v254_v45 }
  0xf4   :  { %565 = vmatprep.mubr.msk.f32.mxu1 %vm600_vm0, %v599_v28 }
 0x1af   :  { %v247_v46 = vpop.f32.mrf.mxu1 }
 0x1b0   :  { %v248_v61 = vadd.f32 %v247_v46, %v176_v59 }
 0x1b1   :  { %v557_v47 = vpop.f32.mrf.mxu1 }
 0x1b2   :  { %v252_v0 = vmul.f32 0.2, %v248_v61  ;;  %vm251_vm8 = vcmp.gt.f32.partialorder %v248_v61, 0.0 }
 0x1b3   :  { %v332_v49 = vpop.f32.mrf.mxu1 }
 0x1b4   :  { %v333_v50 = vadd.f32 %v332_v49, %v260_v48  ;;  %v253_v6 = vsel %vm251_vm8, %v248_v61, %v252_v0 }
 0x1b5   :  { %v562_v51 = vpop.f32.mrf.mxu1  ;;  %v441_v11 = vmul.f32 %v440_v4, %v253_v6 }
 0x1b6   :  { %vm336_vm5 = vcmp.gt.f32.partialorder %v333_v50, 0.0  ;;  %v337_v52 = vmul.f32 0.2, %v333_v50 }
 0x1b8   :  { %v338_v54 = vsel %vm336_vm5, %v333_v50, %v337_v52 }
 0x1b9   :  { %564 = vmatpush3.msk.msra.mxu1 %vm354_vm6, %v338_v54 }
 0x1ba   :  { %566 = vmatmul.mubr.msk.f32.vlgmr.msra.gmra.mxu1 %vm350_vm7, %v339_v53 }
 0x27a   :  { %v424_v1 = vpop.f32.mrf.mxu1 }
 0x27b   :  { %v425_v3 = vadd.f32 %v424_v1, %v349_v62 }
 0x27c   :  { %v567_v5 = vpop.f32.mrf.mxu1 }
 0x27d   :  { %vm428_vm9 = vcmp.gt.f32.partialorder %v425_v3, 0.0  ;;  %v429_v7 = vmul.f32 0.2, %v425_v3 }
 0x27f   :  { %v430_v10 = vsel %vm428_vm9, %v425_v3, %v429_v7 }
 0x280   :  { %v453_v12 = vmul.f32 %v452_v8, %v430_v10 }
 0x282   :  { %v455_v14 = vadd.f32 %v453_v12, %v441_v11 }
 0x284   :  { %v466_v15 = vadd.f32 %v465_v13, %v455_v14 }
 0x286   :  { %v467_v16 = vmul.f32 0.5, %v466_v15 }
 0x288   :  { %574 = vtanh.f32 %v467_v16 }
 0x295   :  { %v575_v17 = vpop.eup %574 }
 0x296   :  { %v469_v18 = vadd.f32 1.0, %v575_v17 }
 0x298   :  { %v470_v19 = vmul.f32 0.5, %v469_v18 }
 0x29a   :  { %472 = vst.msk [vmem:[#allocation7] sm:$0x1] %vm471_vm10, %v470_v19 }
 0x29b   :  { %587 = shalt.err (!%p584_p4)
}
 0x29c   :  { %482 = dma.vmem_to_hbm [thread:$0]  %s480_s8, 16, %s777_s13, [#allocation8]  }
 0x29d   :  { %596 = dma.done.wait [#allocation8], 16  }
 0x29e   :  { %597 = vsyncadd [#allocation8], 4294967280 }
 0x29f   :  { %486 = vsyncpa [#allocation8], 1 }

</bundles_post_ra>
